<compile_context>
chip_gen: v6e
topology: v6e:2x2x1
jax: 0.10.0
libtpu: 0.0.40
codegen_flags: <defaults>
</compile_context>

<pallas_src>
import functools

import jax
import jax.numpy as jnp
from jax.experimental import pallas as pl
from jax.experimental.pallas import tpu as pltpu

_MiB = 1024 * 1024


def _leaky_relu(x, slope=0.1):
    # max(x, 0.1*x): 2 VALU ops instead of cmp+mul+select.
    return jnp.maximum(x, slope * x)


# -----------------------------------------------------------------------------
# Kernel
# -----------------------------------------------------------------------------
def dueling_q_kernel(x_ref,
                     w_in_ref, b_in_ref,
                     w0a_ref, b0a_ref, w0b_ref, b0b_ref,
                     w1a_ref, b1a_ref, w1b_ref, b1b_ref,
                     w_out_ref, b_out_ref,
                     q_ref, acc_ref,
                     *, seq_len, mask_l, input_on_mxu):
    t = pl.program_id(1)                      # L-tile (reduction) axis

    @pl.when(t == 0)
    def _init():
        acc_ref[...] = jnp.zeros_like(acc_ref)

    nb, tl, s = x_ref.shape                   # (batch tile, L tile, state_size)
    rows = nb * tl
    x_in = x_ref[...].reshape(rows, s)        # (rows, state_size) f32

    # --- input layer ---------------------------------------------------------
    if input_on_mxu:
        # v6e/v7x: offload the tiny K=state_size contraction to the MXU (it has
        # slack at ch=128) and keep the VPU slot for the elementwise tail.
        h = jnp.dot(x_in.astype(jnp.bfloat16),
                    w_in_ref[...].astype(jnp.bfloat16),
                    preferred_element_type=jnp.float32) + b_in_ref[...]
    else:
        # v5e: 4x128^2 MXU is already saturated by the chxch matmuls -> VPU FMAs.
        w_in = w_in_ref[...]
        h = x_in[:, 0:1] * w_in[0:1, :] + b_in_ref[...]
        for k in range(1, s):                 # static loop, s == state_size
            h = h + x_in[:, k:k + 1] * w_in[k:k + 1, :]
    x = _leaky_relu(h)                        # (rows, ch) f32

    # --- residual blocks: bf16 matmul inputs, f32 accumulation ----------------
    def res_block(xin, wa_ref, ba_ref, wb_ref, bb_ref):
        hh = _leaky_relu(
            jnp.dot(xin.astype(jnp.bfloat16), wa_ref[...],
                    preferred_element_type=jnp.float32) + ba_ref[...])
        hh = jnp.dot(hh.astype(jnp.bfloat16), wb_ref[...],
                     preferred_element_type=jnp.float32) + bb_ref[...]
        return _leaky_relu(hh + xin)

    x = res_block(x, w0a_ref, b0a_ref, w0b_ref, b0b_ref)
    x = res_block(x, w1a_ref, b1a_ref, w1b_ref, b1b_ref)

    # xVal == xAdv == LeakyReLU(Conv_out(x)) in the original forward.
    y = _leaky_relu(
        jnp.dot(x.astype(jnp.bfloat16), w_out_ref[...],
                preferred_element_type=jnp.float32) + b_out_ref[...])

    # --- fused dueling head: accumulate per-batch L-means ---------------------
    ch = y.shape[-1]
    y3 = y.reshape(nb, tl, ch)
    if mask_l:                                # L was padded -> mask pad rows
        pos = jax.lax.broadcasted_iota(jnp.int32, (1, tl, 1), 1) + t * tl
        y3 = jnp.where(pos < seq_len, y3, 0.0)
    # Scale each partial sum by 1/seq_len as it is accumulated (better f32
    # precision at large L than one big raw sum divided at the end).
    acc_ref[...] += jnp.sum(y3, axis=1) * (1.0 / seq_len)

    @pl.when(t == pl.num_programs(1) - 1)
    def _finalize():
        m = acc_ref[...]                      # mean_L(y), (nb, ch)
        # q = xAdv + xVal - mean_ch(xAdv), then mean over L (means commute).
        q_ref[...] = 2.0 * m - jnp.mean(m, axis=-1, keepdims=True)


# -----------------------------------------------------------------------------
# Generation-aware sizing + tile planning
# -----------------------------------------------------------------------------
def _hw_plan(ch):
    """Returns (row_cap, vmem_limit_bytes, num_tensorcores, is_v5e).

    v5e/v6e: 128 MiB VMEM, 1 TC/chip.  v7x: 64 MiB VMEM per TC, 2 TC/chip.
    Unknown chips get conservative (v7x-like) numbers.
    (pltpu.get_tpu_info() is an alternative; device_kind is used for robustness.)
    """
    kind = ""
    try:
        dev = jax.devices()[0]
        if dev.platform == "tpu":
            kind = str(getattr(dev, "device_kind", "")).lower()
    except Exception:
        pass

    if "v5 lite" in kind or "v5e" in kind or "v5litepod" in kind:
        vmem_limit, base_rows, num_tc, is_v5e = 100 * _MiB, 16384, 1, True
    elif "v6" in kind:
        vmem_limit, base_rows, num_tc, is_v5e = 100 * _MiB, 16384, 1, False
    elif "v7" in kind:
        vmem_limit, base_rows, num_tc, is_v5e = 48 * _MiB, 8192, 2, False
    else:
        vmem_limit, base_rows, num_tc, is_v5e = 48 * _MiB, 8192, 1, False

    # ~2 KiB/row of live intermediates at ch=128; keep the working set constant
    # for wider channel counts (module default ch=512).
    row_cap = max(256, (base_rows * 128) // max(int(ch), 128))
    return row_cap, vmem_limit, num_tc, is_v5e


def _round_up(x, m):
    return ((x + m - 1) // m) * m


def _plan_tiles(n, l, row_cap, num_cores):
    """Pick (nb, tl, n_pad, l_pad) with nb * tl <= ~row_cap.

    Pads N/L to the tile grid instead of relying on exact divisors, so prime or
    odd sizes can't silently produce oversized tiles that blow the VMEM budget.
    """
    row_cap = max(int(row_cap), 64)

    # --- batch tile nb -------------------------------------------------------
    tl_wish = min(l, row_cap)                    # L tile if batch were untiled
    nb = min(n, max(1, row_cap // tl_wish))      # row budget at that L tile
    if num_cores > 1 and n >= 2:
        # >= num_cores batch tiles so megacore can shard the "parallel" axis.
        nb = min(nb, -(-n // num_cores))
    if nb < n:
        nb = (nb // 8) * 8                       # tiled batch blocks: mult of 8
        if nb == 0:
            # Can't make an aligned sub-batch tile; keep tiny batches whole,
            # otherwise take 8 rows and shrink the L tile instead.
            nb = n if n <= 8 else 8
    if nb >= n:
        nb, n_pad = n, n
    else:
        n_pad = _round_up(n, nb)

    # --- L tile tl -----------------------------------------------------------
    tl_budget = max(8, row_cap // nb)
    if l <= tl_budget:
        tl, l_pad = l, l
    else:
        tl = max(8, (tl_budget // 8) * 8)
        l_pad = _round_up(l, tl)
    return nb, tl, n_pad, l_pad


# -----------------------------------------------------------------------------
# Parameters
# -----------------------------------------------------------------------------
def init_params(key, state_size, ch):
    """PyTorch-Conv1d-style init (uniform +-1/sqrt(fan_in)).

    Weights are stored transposed, (C_in, C_out), for channels-last matmuls.
    ch x ch weights are stored in bf16 (MXU inputs); input-layer weight and all
    biases stay f32. Only modules that affect the output are materialized
    (Value/Advantage results are dead in forward()).
    """
    def conv_init(k, fan_in, fan_out, w_dtype=jnp.float32):
        kw, kb = jax.random.split(k)
        bound = 1.0 / float(fan_in) ** 0.5
        w = jax.random.uniform(kw, (fan_in, fan_out), jnp.float32, -bound, bound)
        b = jax.random.uniform(kb, (1, fan_out), jnp.float32, -bound, bound)
        return w.astype(w_dtype), b

    keys = jax.random.split(key, 6)
    p = {}
    p["w_in"], p["b_in"] = conv_init(keys[0], state_size, ch)             # f32
    p["w0a"], p["b0a"] = conv_init(keys[1], ch, ch, jnp.bfloat16)
    p["w0b"], p["b0b"] = conv_init(keys[2], ch, ch, jnp.bfloat16)
    p["w1a"], p["b1a"] = conv_init(keys[3], ch, ch, jnp.bfloat16)
    p["w1b"], p["b1b"] = conv_init(keys[4], ch, ch, jnp.bfloat16)
    p["w_out"], p["b_out"] = conv_init(keys[5], ch, ch, jnp.bfloat16)
    return p


# -----------------------------------------------------------------------------
# Wrapper
# -----------------------------------------------------------------------------
def dueling_q_forward(x_ncl, params, *, row_cap=None, input_on_mxu=None):
    """x_ncl: (N, state_size, L), as fed to the PyTorch module. Returns (N, ch)."""
    n, s, l = x_ncl.shape
    ch = params["w_in"].shape[1]

    hw_row_cap, vmem_limit, num_tc, is_v5e = _hw_plan(ch)
    if row_cap is None:
        row_cap = hw_row_cap
    if input_on_mxu is None:
        input_on_mxu = not is_v5e

    nb, tl, n_pad, l_pad = _plan_tiles(n, l, row_cap, num_tc)

    # NCL -> (N, L, C_in), channels last, fused with the f32 cast; pad to the
    # tile grid (padded L positions are masked inside the kernel, padded batch
    # rows are sliced off below).
    # TODO(synk): fold this transpose into the kernel (contract the C axis of
    # NCL blocks directly) to save one HBM round-trip of the (small) input.
    x = jnp.transpose(x_ncl.astype(jnp.float32), (0, 2, 1))
    if (n_pad, l_pad) != (n, l):
        x = jnp.pad(x, ((0, n_pad - n), (0, l_pad - l), (0, 0)))

    grid = (n_pad // nb, l_pad // tl)

    weight_args = (
        params["w_in"], params["b_in"],
        params["w0a"], params["b0a"], params["w0b"], params["b0b"],
        params["w1a"], params["b1a"], params["w1b"], params["b1b"],
        params["w_out"], params["b_out"])

    def const_spec(a):
        nd = a.ndim
        return pl.BlockSpec(a.shape, lambda *_: (0,) * nd)   # resident weights

    in_specs = [pl.BlockSpec((nb, tl, s), lambda b, t: (b, t, 0))]
    in_specs += [const_spec(a) for a in weight_args]

    flops = 2 * n_pad * l_pad * ch * (s + 5 * ch) + 10 * n_pad * l_pad * ch
    bytes_accessed = (n_pad * l_pad * s * 4 + n_pad * ch * 4
                      + sum(int(a.size) * a.dtype.itemsize for a in weight_args))

    kernel = functools.partial(dueling_q_kernel, seq_len=l,
                               mask_l=(l_pad != l), input_on_mxu=input_on_mxu)
    q = pl.pallas_call(
        kernel,
        out_shape=jax.ShapeDtypeStruct((n_pad, ch), jnp.float32),
        grid_spec=pltpu.PrefetchScalarGridSpec(
            num_scalar_prefetch=0,
            grid=grid,
            in_specs=in_specs,
            out_specs=pl.BlockSpec((nb, ch), lambda b, t: (b, 0)),
            scratch_shapes=[pltpu.VMEM((nb, ch), jnp.float32)]),
        compiler_params=pltpu.CompilerParams(
            dimension_semantics=("parallel", "arbitrary"),
            vmem_limit_bytes=vmem_limit),
        cost_estimate=pl.CostEstimate(
            flops=flops, transcendentals=0, bytes_accessed=bytes_accessed),
    )(x, *weight_args)
    return q[:n] if n_pad != n else q


# -----------------------------------------------------------------------------
# Pure-JAX reference (mirrors the PyTorch forward; bf16 matmul inputs like the
# kernel so numerics are comparable)
# -----------------------------------------------------------------------------
def reference_forward(x_ncl, params, *, input_on_mxu=True):
    n, s, l = x_ncl.shape
    x = jnp.transpose(x_ncl.astype(jnp.float32), (0, 2, 1)).reshape(n * l, s)
    if input_on_mxu:
        h = jnp.dot(x.astype(jnp.bfloat16), params["w_in"].astype(jnp.bfloat16),
                    preferred_element_type=jnp.float32) + params["b_in"]
    else:
        h = jnp.dot(x, params["w_in"],
                    precision=jax.lax.Precision.HIGHEST) + params["b_in"]
    x = _leaky_relu(h)
    for a, b in (("0a", "0b"), ("1a", "1b")):
        x0 = x
        h = _leaky_relu(
            jnp.dot(x.astype(jnp.bfloat16), params["w" + a],
                    preferred_element_type=jnp.float32) + params["b" + a])
        h = jnp.dot(h.astype(jnp.bfloat16), params["w" + b],
                    preferred_element_type=jnp.float32) + params["b" + b]
        x = _leaky_relu(h + x0)
    y = _leaky_relu(
        jnp.dot(x.astype(jnp.bfloat16), params["w_out"],
                preferred_element_type=jnp.float32) + params["b_out"])
    avg = jnp.mean(y, axis=-1, keepdims=True)
    q_full = y + y - avg
    return jnp.mean(q_full.reshape(n, l, -1), axis=1)


if __name__ == "__main__":
    # Small shapes consistent with the module: batch=2, state_size=4, L=8, ch=128.
    N, STATE, L, CH = 2, 4, 8, 128

    key = jax.random.PRNGKey(0)
    k_x, k_p, k_x2 = jax.random.split(key, 3)
    params = init_params(k_p, STATE, CH)
    use_mxu = not _hw_plan(CH)[3]

    # Test 1: tiny shapes (single grid step).
    x = jax.random.normal(k_x, (N, STATE, L), dtype=jnp.float32)   # NCL layout
    q = jax.block_until_ready(dueling_q_forward(x, params))
    q_ref = jax.block_until_ready(
        reference_forward(x, params, input_on_mxu=use_mxu))
    assert q.shape == (N, CH)
    assert jnp.allclose(q, q_ref, rtol=1e-2, atol=1e-2), "mismatch vs reference (1)"

    # Test 2: non-multiple L with a forced-small row cap -> multiple L tiles,
    # L padding + in-kernel masking, accumulation across grid steps.
    L2 = 200
    x2 = jax.random.normal(k_x2, (N, STATE, L2), dtype=jnp.float32)
    q2 = jax.block_until_ready(dueling_q_forward(x2, params, row_cap=64))
    q2_ref = jax.block_until_ready(
        reference_forward(x2, params, input_on_mxu=use_mxu))
    assert q2.shape == (N, CH)
    assert jnp.allclose(q2, q2_ref, rtol=1e-2, atol=1e-2), "mismatch vs reference (2)"

    print("KERNEL_OK")
</pallas_src>

<mosaic_0001>
module attributes {stable_mosaic.version = 11 : i64} {
  func.func @dueling_q_kernel(%arg0: i32, %arg1: i32, %arg2: memref<2x8x4xf32, #tpu.memory_space<vmem>>, %arg3: memref<4x128xf32, #tpu.memory_space<vmem>>, %arg4: memref<1x128xf32, #tpu.memory_space<vmem>>, %arg5: memref<128x128xbf16, #tpu.memory_space<vmem>>, %arg6: memref<1x128xf32, #tpu.memory_space<vmem>>, %arg7: memref<128x128xbf16, #tpu.memory_space<vmem>>, %arg8: memref<1x128xf32, #tpu.memory_space<vmem>>, %arg9: memref<128x128xbf16, #tpu.memory_space<vmem>>, %arg10: memref<1x128xf32, #tpu.memory_space<vmem>>, %arg11: memref<128x128xbf16, #tpu.memory_space<vmem>>, %arg12: memref<1x128xf32, #tpu.memory_space<vmem>>, %arg13: memref<128x128xbf16, #tpu.memory_space<vmem>>, %arg14: memref<1x128xf32, #tpu.memory_space<vmem>>, %arg15: memref<2x128xf32, #tpu.memory_space<vmem>>, %arg16: memref<2x128xf32, #tpu.memory_space<vmem>>) attributes {dimension_semantics = [#tpu.dimension_semantics<parallel>, #tpu.dimension_semantics<arbitrary>], iteration_bounds = array<i64: 1, 1>, scalar_prefetch = 0 : i64, scratch_operands = 1 : i64, tpu.core_type = #tpu.core_type<tc>, window_params = [{transform_indices = @transform_0, window_bounds = array<i64: 2, 8, 4>}, {pipeline_mode = #tpu.pipeline_mode<synchronous>, transform_indices = @transform_1, window_bounds = array<i64: 4, 128>}, {pipeline_mode = #tpu.pipeline_mode<synchronous>, transform_indices = @transform_2, window_bounds = array<i64: 1, 128>}, {pipeline_mode = #tpu.pipeline_mode<synchronous>, transform_indices = @transform_3, window_bounds = array<i64: 128, 128>}, {pipeline_mode = #tpu.pipeline_mode<synchronous>, transform_indices = @transform_4, window_bounds = array<i64: 1, 128>}, {pipeline_mode = #tpu.pipeline_mode<synchronous>, transform_indices = @transform_5, window_bounds = array<i64: 128, 128>}, {pipeline_mode = #tpu.pipeline_mode<synchronous>, transform_indices = @transform_6, window_bounds = array<i64: 1, 128>}, {pipeline_mode = #tpu.pipeline_mode<synchronous>, transform_indices = @transform_7, window_bounds = array<i64: 128, 128>}, {pipeline_mode = #tpu.pipeline_mode<synchronous>, transform_indices = @transform_8, window_bounds = array<i64: 1, 128>}, {pipeline_mode = #tpu.pipeline_mode<synchronous>, transform_indices = @transform_9, window_bounds = array<i64: 128, 128>}, {pipeline_mode = #tpu.pipeline_mode<synchronous>, transform_indices = @transform_10, window_bounds = array<i64: 1, 128>}, {pipeline_mode = #tpu.pipeline_mode<synchronous>, transform_indices = @transform_11, window_bounds = array<i64: 128, 128>}, {pipeline_mode = #tpu.pipeline_mode<synchronous>, transform_indices = @transform_12, window_bounds = array<i64: 1, 128>}, {transform_indices = @transform_13, window_bounds = array<i64: 2, 128>}]} {
    %c0_i32 = arith.constant 0 : i32
    %0 = arith.cmpi eq, %arg1, %c0_i32 : i32
    %1 = arith.extui %0 : i1 to i32
    %c0_i32_0 = arith.constant 0 : i32
    %2 = arith.cmpi ne, %1, %c0_i32_0 : i32
    scf.if %2 {
      %cst_46 = arith.constant 0.000000e+00 : f32
      %72 = vector.broadcast %cst_46 : f32 to vector<2x128xf32>
      %c0_47 = arith.constant 0 : index
      %c0_48 = arith.constant 0 : index
      %73 = vector.load %arg16[%c0_47, %c0_48] : memref<2x128xf32, #tpu.memory_space<vmem>>, vector<2x128xf32>
      tpu.vector_store %arg16[%c0_47, %c0_48], %72 {strides = array<i32>} : memref<2x128xf32, #tpu.memory_space<vmem>>, vector<2x128xf32>,
    } else {
    }
    %c0 = arith.constant 0 : index
    %c0_1 = arith.constant 0 : index
    %c0_2 = arith.constant 0 : index
    %3 = vector.load %arg2[%c0, %c0_1, %c0_2] : memref<2x8x4xf32, #tpu.memory_space<vmem>>, vector<2x8x4xf32>
    %4 = vector.shape_cast %3 : vector<2x8x4xf32> to vector<16x4xf32>
    %5 = arith.truncf %4 : vector<16x4xf32> to vector<16x4xbf16>
    %c0_3 = arith.constant 0 : index
    %c0_4 = arith.constant 0 : index
    %6 = vector.load %arg3[%c0_3, %c0_4] : memref<4x128xf32, #tpu.memory_space<vmem>>, vector<4x128xf32>
    %7 = arith.truncf %6 : vector<4x128xf32> to vector<4x128xbf16>
    %cst = arith.constant dense<0.000000e+00> : vector<16x128xf32>
    %8 = tpu.matmul %5, %7, %cst {dimension_numbers = #tpu.dot_dimension_numbers<[1], [0], [0], [1], [0, 0, 1, 1], [], []>} : vector<16x4xbf16>, vector<4x128xbf16>, vector<16x128xf32> -> vector<16x128xf32>
    %c0_5 = arith.constant 0 : index
    %c0_6 = arith.constant 0 : index
    %9 = vector.load %arg4[%c0_5, %c0_6] : memref<1x128xf32, #tpu.memory_space<vmem>>, vector<1x128xf32>
    %10 = vector.broadcast %9 : vector<1x128xf32> to vector<16x128xf32>
    %11 = arith.addf %8, %10 : vector<16x128xf32>
    %cst_7 = arith.constant 1.000000e-01 : f32
    %12 = vector.broadcast %cst_7 : f32 to vector<16x128xf32>
    %13 = arith.mulf %12, %11 : vector<16x128xf32>
    %14 = arith.maximumf %11, %13 : vector<16x128xf32>
    %15 = arith.truncf %14 : vector<16x128xf32> to vector<16x128xbf16>
    %c0_8 = arith.constant 0 : index
    %c0_9 = arith.constant 0 : index
    %16 = vector.load %arg5[%c0_8, %c0_9] : memref<128x128xbf16, #tpu.memory_space<vmem>>, vector<128x128xbf16>
    %cst_10 = arith.constant dense<0.000000e+00> : vector<16x128xf32>
    %17 = tpu.matmul %15, %16, %cst_10 {dimension_numbers = #tpu.dot_dimension_numbers<[1], [0], [0], [1], [0, 0, 1, 1], [], []>} : vector<16x128xbf16>, vector<128x128xbf16>, vector<16x128xf32> -> vector<16x128xf32>
    %c0_11 = arith.constant 0 : index
    %c0_12 = arith.constant 0 : index
    %18 = vector.load %arg6[%c0_11, %c0_12] : memref<1x128xf32, #tpu.memory_space<vmem>>, vector<1x128xf32>
    %19 = vector.broadcast %18 : vector<1x128xf32> to vector<16x128xf32>
    %20 = arith.addf %17, %19 : vector<16x128xf32>
    %cst_13 = arith.constant 1.000000e-01 : f32
    %21 = vector.broadcast %cst_13 : f32 to vector<16x128xf32>
    %22 = arith.mulf %21, %20 : vector<16x128xf32>
    %23 = arith.maximumf %20, %22 : vector<16x128xf32>
    %24 = arith.truncf %23 : vector<16x128xf32> to vector<16x128xbf16>
    %c0_14 = arith.constant 0 : index
    %c0_15 = arith.constant 0 : index
    %25 = vector.load %arg7[%c0_14, %c0_15] : memref<128x128xbf16, #tpu.memory_space<vmem>>, vector<128x128xbf16>
    %cst_16 = arith.constant dense<0.000000e+00> : vector<16x128xf32>
    %26 = tpu.matmul %24, %25, %cst_16 {dimension_numbers = #tpu.dot_dimension_numbers<[1], [0], [0], [1], [0, 0, 1, 1], [], []>} : vector<16x128xbf16>, vector<128x128xbf16>, vector<16x128xf32> -> vector<16x128xf32>
    %c0_17 = arith.constant 0 : index
    %c0_18 = arith.constant 0 : index
    %27 = vector.load %arg8[%c0_17, %c0_18] : memref<1x128xf32, #tpu.memory_space<vmem>>, vector<1x128xf32>
    %28 = vector.broadcast %27 : vector<1x128xf32> to vector<16x128xf32>
    %29 = arith.addf %26, %28 : vector<16x128xf32>
    %30 = arith.addf %29, %14 : vector<16x128xf32>
    %cst_19 = arith.constant 1.000000e-01 : f32
    %31 = vector.broadcast %cst_19 : f32 to vector<16x128xf32>
    %32 = arith.mulf %31, %30 : vector<16x128xf32>
    %33 = arith.maximumf %30, %32 : vector<16x128xf32>
    %34 = arith.truncf %33 : vector<16x128xf32> to vector<16x128xbf16>
    %c0_20 = arith.constant 0 : index
    %c0_21 = arith.constant 0 : index
    %35 = vector.load %arg9[%c0_20, %c0_21] : memref<128x128xbf16, #tpu.memory_space<vmem>>, vector<128x128xbf16>
    %cst_22 = arith.constant dense<0.000000e+00> : vector<16x128xf32>
    %36 = tpu.matmul %34, %35, %cst_22 {dimension_numbers = #tpu.dot_dimension_numbers<[1], [0], [0], [1], [0, 0, 1, 1], [], []>} : vector<16x128xbf16>, vector<128x128xbf16>, vector<16x128xf32> -> vector<16x128xf32>
    %c0_23 = arith.constant 0 : index
    %c0_24 = arith.constant 0 : index
    %37 = vector.load %arg10[%c0_23, %c0_24] : memref<1x128xf32, #tpu.memory_space<vmem>>, vector<1x128xf32>
    %38 = vector.broadcast %37 : vector<1x128xf32> to vector<16x128xf32>
    %39 = arith.addf %36, %38 : vector<16x128xf32>
    %cst_25 = arith.constant 1.000000e-01 : f32
    %40 = vector.broadcast %cst_25 : f32 to vector<16x128xf32>
    %41 = arith.mulf %40, %39 : vector<16x128xf32>
    %42 = arith.maximumf %39, %41 : vector<16x128xf32>
    %43 = arith.truncf %42 : vector<16x128xf32> to vector<16x128xbf16>
    %c0_26 = arith.constant 0 : index
    %c0_27 = arith.constant 0 : index
    %44 = vector.load %arg11[%c0_26, %c0_27] : memref<128x128xbf16, #tpu.memory_space<vmem>>, vector<128x128xbf16>
    %cst_28 = arith.constant dense<0.000000e+00> : vector<16x128xf32>
    %45 = tpu.matmul %43, %44, %cst_28 {dimension_numbers = #tpu.dot_dimension_numbers<[1], [0], [0], [1], [0, 0, 1, 1], [], []>} : vector<16x128xbf16>, vector<128x128xbf16>, vector<16x128xf32> -> vector<16x128xf32>
    %c0_29 = arith.constant 0 : index
    %c0_30 = arith.constant 0 : index
    %46 = vector.load %arg12[%c0_29, %c0_30] : memref<1x128xf32, #tpu.memory_space<vmem>>, vector<1x128xf32>
    %47 = vector.broadcast %46 : vector<1x128xf32> to vector<16x128xf32>
    %48 = arith.addf %45, %47 : vector<16x128xf32>
    %49 = arith.addf %48, %33 : vector<16x128xf32>
    %cst_31 = arith.constant 1.000000e-01 : f32
    %50 = vector.broadcast %cst_31 : f32 to vector<16x128xf32>
    %51 = arith.mulf %50, %49 : vector<16x128xf32>
    %52 = arith.maximumf %49, %51 : vector<16x128xf32>
    %53 = arith.truncf %52 : vector<16x128xf32> to vector<16x128xbf16>
    %c0_32 = arith.constant 0 : index
    %c0_33 = arith.constant 0 : index
    %54 = vector.load %arg13[%c0_32, %c0_33] : memref<128x128xbf16, #tpu.memory_space<vmem>>, vector<128x128xbf16>
    %cst_34 = arith.constant dense<0.000000e+00> : vector<16x128xf32>
    %55 = tpu.matmul %53, %54, %cst_34 {dimension_numbers = #tpu.dot_dimension_numbers<[1], [0], [0], [1], [0, 0, 1, 1], [], []>} : vector<16x128xbf16>, vector<128x128xbf16>, vector<16x128xf32> -> vector<16x128xf32>
    %c0_35 = arith.constant 0 : index
    %c0_36 = arith.constant 0 : index
    %56 = vector.load %arg14[%c0_35, %c0_36] : memref<1x128xf32, #tpu.memory_space<vmem>>, vector<1x128xf32>
    %57 = vector.broadcast %56 : vector<1x128xf32> to vector<16x128xf32>
    %58 = arith.addf %55, %57 : vector<16x128xf32>
    %cst_37 = arith.constant 1.000000e-01 : f32
    %59 = vector.broadcast %cst_37 : f32 to vector<16x128xf32>
    %60 = arith.mulf %59, %58 : vector<16x128xf32>
    %61 = arith.maximumf %58, %60 : vector<16x128xf32>
    %62 = vector.shape_cast %61 : vector<16x128xf32> to vector<2x8x128xf32>
    %c0_38 = arith.constant 0 : index
    %c0_39 = arith.constant 0 : index
    %63 = vector.load %arg16[%c0_38, %c0_39] : memref<2x128xf32, #tpu.memory_space<vmem>>, vector<2x128xf32>
    %cst_40 = arith.constant dense<0.000000e+00> : vector<2x128xf32>
    %64 = vector.multi_reduction <add>, %62, %cst_40 [1] : vector<2x8x128xf32> to vector<2x128xf32>
    %cst_41 = arith.constant 1.250000e-01 : f32
    %65 = vector.broadcast %cst_41 : f32 to vector<2x128xf32>
    %66 = arith.mulf %64, %65 : vector<2x128xf32>
    %67 = arith.addf %63, %66 : vector<2x128xf32>
    %c0_42 = arith.constant 0 : index
    %c0_43 = arith.constant 0 : index
    %68 = vector.load %arg16[%c0_42, %c0_43] : memref<2x128xf32, #tpu.memory_space<vmem>>, vector<2x128xf32>
    tpu.vector_store %arg16[%c0_42, %c0_43], %67 {strides = array<i32>} : memref<2x128xf32, #tpu.memory_space<vmem>>, vector<2x128xf32>,
    %c0_i32_44 = arith.constant 0 : i32
    %69 = arith.cmpi eq, %arg1, %c0_i32_44 : i32
    %70 = arith.extui %69 : i1 to i32
    %c0_i32_45 = arith.constant 0 : i32
    %71 = arith.cmpi ne, %70, %c0_i32_45 : i32
    scf.if %71 {
      %c0_46 = arith.constant 0 : index
      %c0_47 = arith.constant 0 : index
      %72 = vector.load %arg16[%c0_46, %c0_47] : memref<2x128xf32, #tpu.memory_space<vmem>>, vector<2x128xf32>
      %cst_48 = arith.constant 2.000000e+00 : f32
      %73 = vector.broadcast %cst_48 : f32 to vector<2x128xf32>
      %74 = arith.mulf %73, %72 : vector<2x128xf32>
      %cst_49 = arith.constant dense<0.000000e+00> : vector<2xf32>
      %75 = vector.multi_reduction <add>, %72, %cst_49 [1] : vector<2x128xf32> to vector<2xf32>
      %76 = vector.shape_cast %75 : vector<2xf32> to vector<2x1xf32>
      %cst_50 = arith.constant 1.280000e+02 : f32
      %77 = vector.broadcast %cst_50 : f32 to vector<2x1xf32>
      %78 = arith.divf %76, %77 : vector<2x1xf32>
      %79 = vector.broadcast %78 : vector<2x1xf32> to vector<2x128xf32>
      %80 = arith.subf %74, %79 : vector<2x128xf32>
      %c0_51 = arith.constant 0 : index
      %c0_52 = arith.constant 0 : index
      %81 = vector.load %arg15[%c0_51, %c0_52] : memref<2x128xf32, #tpu.memory_space<vmem>>, vector<2x128xf32>
      tpu.vector_store %arg15[%c0_51, %c0_52], %80 {strides = array<i32>} : memref<2x128xf32, #tpu.memory_space<vmem>>, vector<2x128xf32>,
    } else {
    }
    return
  }
  func.func @transform_0(%arg0: i32, %arg1: i32) -> (i32, i32, i32) {
    %c0_i32 = arith.constant 0 : i32
    %c0_i32_0 = arith.constant 0 : i32
    return %arg0, %arg1, %c0_i32 : i32, i32, i32
  }
  func.func @transform_1(%arg0: i32, %arg1: i32) -> (i32, i32) {
    %c0_i32 = arith.constant 0 : i32
    %c0_i32_0 = arith.constant 0 : i32
    %c0_i32_1 = arith.constant 0 : i32
    return %c0_i32, %c0_i32_0 : i32, i32
  }
  func.func @transform_2(%arg0: i32, %arg1: i32) -> (i32, i32) {
    %c0_i32 = arith.constant 0 : i32
    %c0_i32_0 = arith.constant 0 : i32
    %c0_i32_1 = arith.constant 0 : i32
    return %c0_i32, %c0_i32_0 : i32, i32
  }
  func.func @transform_3(%arg0: i32, %arg1: i32) -> (i32, i32) {
    %c0_i32 = arith.constant 0 : i32
    %c0_i32_0 = arith.constant 0 : i32
    %c0_i32_1 = arith.constant 0 : i32
    return %c0_i32, %c0_i32_0 : i32, i32
  }
  func.func @transform_4(%arg0: i32, %arg1: i32) -> (i32, i32) {
    %c0_i32 = arith.constant 0 : i32
    %c0_i32_0 = arith.constant 0 : i32
    %c0_i32_1 = arith.constant 0 : i32
    return %c0_i32, %c0_i32_0 : i32, i32
  }
  func.func @transform_5(%arg0: i32, %arg1: i32) -> (i32, i32) {
    %c0_i32 = arith.constant 0 : i32
    %c0_i32_0 = arith.constant 0 : i32
    %c0_i32_1 = arith.constant 0 : i32
    return %c0_i32, %c0_i32_0 : i32, i32
  }
  func.func @transform_6(%arg0: i32, %arg1: i32) -> (i32, i32) {
    %c0_i32 = arith.constant 0 : i32
    %c0_i32_0 = arith.constant 0 : i32
    %c0_i32_1 = arith.constant 0 : i32
    return %c0_i32, %c0_i32_0 : i32, i32
  }
  func.func @transform_7(%arg0: i32, %arg1: i32) -> (i32, i32) {
    %c0_i32 = arith.constant 0 : i32
    %c0_i32_0 = arith.constant 0 : i32
    %c0_i32_1 = arith.constant 0 : i32
    return %c0_i32, %c0_i32_0 : i32, i32
  }
  func.func @transform_8(%arg0: i32, %arg1: i32) -> (i32, i32) {
    %c0_i32 = arith.constant 0 : i32
    %c0_i32_0 = arith.constant 0 : i32
    %c0_i32_1 = arith.constant 0 : i32
    return %c0_i32, %c0_i32_0 : i32, i32
  }
  func.func @transform_9(%arg0: i32, %arg1: i32) -> (i32, i32) {
    %c0_i32 = arith.constant 0 : i32
    %c0_i32_0 = arith.constant 0 : i32
    %c0_i32_1 = arith.constant 0 : i32
    return %c0_i32, %c0_i32_0 : i32, i32
  }
  func.func @transform_10(%arg0: i32, %arg1: i32) -> (i32, i32) {
    %c0_i32 = arith.constant 0 : i32
    %c0_i32_0 = arith.constant 0 : i32
    %c0_i32_1 = arith.constant 0 : i32
    return %c0_i32, %c0_i32_0 : i32, i32
  }
  func.func @transform_11(%arg0: i32, %arg1: i32) -> (i32, i32) {
    %c0_i32 = arith.constant 0 : i32
    %c0_i32_0 = arith.constant 0 : i32
    %c0_i32_1 = arith.constant 0 : i32
    return %c0_i32, %c0_i32_0 : i32, i32
  }
  func.func @transform_12(%arg0: i32, %arg1: i32) -> (i32, i32) {
    %c0_i32 = arith.constant 0 : i32
    %c0_i32_0 = arith.constant 0 : i32
    %c0_i32_1 = arith.constant 0 : i32
    return %c0_i32, %c0_i32_0 : i32, i32
  }
  func.func @transform_13(%arg0: i32, %arg1: i32) -> (i32, i32) {
    %c0_i32 = arith.constant 0 : i32
    %c0_i32_0 = arith.constant 0 : i32
    return %arg0, %c0_i32 : i32, i32
  }
}

</mosaic_0001>

<bundles_post_ra>
// kernel: tpu_custom_call.1
= control target key start
LH: loop header
LB: loop body
LE: loop exit
PB: predicated region body
PF: predicated region fallthrough
CT: control target
= control target key end

     0   :  { %18 = vsyncpa [#allocation4], 0  ;;  %s1406_s0 = inlined_call_operand.vmem [shape: f32[2,8,4], index: 0, kind: input, shape index: {}]   ;;  %s1407_s1 = inlined_call_operand.vmem [shape: f32[4,128], index: 1, kind: input, shape index: {}]   ;;  %s1408_s2 = inlined_call_operand.vmem [shape: f32[1,128], index: 2, kind: input, shape index: {}]   ;;  %s1409_s3 = inlined_call_operand.hbm [shape: bf16[128,128], index: 3, kind: input, shape index: {}]   ;;  %s1410_s4 = inlined_call_operand.vmem [shape: f32[1,128], index: 4, kind: input, shape index: {}]   ;;  %s1411_s5 = inlined_call_operand.hbm [shape: bf16[128,128], index: 5, kind: input, shape index: {}]   ;;  %s1412_s6 = inlined_call_operand.vmem [shape: f32[1,128], index: 6, kind: input, shape index: {}]   ;;  %s1413_s7 = inlined_call_operand.hbm [shape: bf16[128,128], index: 7, kind: input, shape index: {}]   ;;  %s1414_s8 = inlined_call_operand.vmem [shape: f32[1,128], index: 8, kind: input, shape index: {}]   ;;  %s1415_s9 = inlined_call_operand.hbm [shape: bf16[128,128], index: 9, kind: input, shape index: {}]   ;;  %s1416_s10 = inlined_call_operand.vmem [shape: f32[1,128], index: 10, kind: input, shape index: {}]   ;;  %s1417_s11 = inlined_call_operand.hbm [shape: bf16[128,128], index: 11, kind: input, shape index: {}]   ;;  %s1418_s12 = inlined_call_operand.vmem [shape: f32[1,128], index: 12, kind: input, shape index: {}]   ;;  %s1419_s13 = inlined_call_operand.hbm [shape: f32[2,128], index: 13, kind: output, shape index: {}]  }
   0x1   :  { %19 = vsyncpa [#allocation7], 0 }
   0x2   :  { %20 = vsyncpa [#allocation10], 0 }
   0x3   :  { %21 = vsyncpa [#allocation5], 0  ;;  %s1202_s25 = smov [#allocation6]   ;;  %s1203_s27 = smov [#allocation9]  }
   0x4   :  { %s47_s26 = sshll.u32 %s1202_s25, 4  ;;  %s75_s28 = sshll.u32 %s1203_s27, 4  ;;  %s48_s26 = int_to_ptr.vmem [resolvable:$true] %s47_s26  ;;  %s76_s28 = int_to_ptr.vmem [resolvable:$true] %s75_s28 }
   0x5   :  { %s1082_s29 = scalar_lea.vmem %s48_s26, 1024  ;;  %p1087_p1 = scmp.lt.s32.totalorder %s48_s26, %s48_s26 }
   0x6   :  { %p1083_p0 = scmp.ne.s32.totalorder %s48_s26, %s1082_s29  ;;  %p1088_p2 = scmp.lt.s32.totalorder %s1082_s29, %s1082_s29 }
   0x8   :  { %p1089_p3 = por %p1088_p2, %p1087_p1 }
   0xa   :  { %p1090_p4 = pnand %p1089_p3, %p1083_p0 }
   0xc   :  { %1093 = shalt.err (!%p1090_p4)
}
   0xd   :  { %s1204_s30 = smov 64   ;;  %s1205_s14 = smov 4  }
   0xe   :  { %53 = dma.hbm_to_vmem [thread:$0]  %s1411_s5, 1024, %s48_s26, [#allocation7], %s1204_s30, %s1204_s30, %s1205_s14  }
   0xf   :  { %s1102_s17 = scalar_lea.vmem %s76_s28, 1024  ;;  %p1107_p6 = scmp.lt.s32.totalorder %s76_s28, %s76_s28 }
  0x10   :  { %p1103_p5 = scmp.ne.s32.totalorder %s76_s28, %s1102_s17  ;;  %p1108_p7 = scmp.lt.s32.totalorder %s1102_s17, %s1102_s17 }
  0x12   :  { %p1109_p8 = por %p1108_p7, %p1107_p6 }
  0x14   :  { %p1110_p9 = pnand %p1109_p8, %p1103_p5 }
  0x16   :  { %1113 = shalt.err (!%p1110_p9)
}
  0x17   :  { %81 = dma.hbm_to_vmem [thread:$0]  %s1415_s9, 1024, %s76_s28, [#allocation10], %s1204_s30, %s1204_s30, %s1205_s14  }
  0x18   :  { %s1206_s20 = smov [#allocation3]   ;;  %s1207_s22 = smov [#allocation8]  }
  0x19   :  { %s33_s21 = sshll.u32 %s1206_s20, 4  ;;  %s61_s23 = sshll.u32 %s1207_s22, 4  ;;  %s34_s21 = int_to_ptr.vmem [resolvable:$true] %s33_s21  ;;  %s62_s23 = int_to_ptr.vmem [resolvable:$true] %s61_s23 }
  0x1a   :  { %s1122_s5 = scalar_lea.vmem %s34_s21, 1024  ;;  %p1127_p11 = scmp.lt.s32.totalorder %s34_s21, %s34_s21 }
  0x1b   :  { %p1123_p10 = scmp.ne.s32.totalorder %s34_s21, %s1122_s5  ;;  %p1128_p12 = scmp.lt.s32.totalorder %s1122_s5, %s1122_s5 }
  0x1d   :  { %p1129_p13 = por %p1128_p12, %p1127_p11 }
  0x1f   :  { %p1130_p0 = pnand %p1129_p13, %p1123_p10 }
  0x21   :  { %1133 = shalt.err (!%p1130_p0)
}
  0x22   :  { %39 = dma.hbm_to_vmem [thread:$0]  %s1409_s3, 1024, %s34_s21, [#allocation4], %s1204_s30, %s1204_s30, %s1205_s14  }
  0x23   :  { %s1142_s9 = scalar_lea.vmem %s62_s23, 1024  ;;  %p1147_p2 = scmp.lt.s32.totalorder %s62_s23, %s62_s23 }
  0x24   :  { %p1143_p1 = scmp.ne.s32.totalorder %s62_s23, %s1142_s9  ;;  %p1148_p3 = scmp.lt.s32.totalorder %s1142_s9, %s1142_s9 }
  0x26   :  { %p1149_p4 = por %p1148_p3, %p1147_p2 }
  0x28   :  { %p1150_p5 = pnand %p1149_p4, %p1143_p1 }
  0x2a   :  { %1153 = shalt.err (!%p1150_p5)
}
  0x2b   :  { %67 = dma.hbm_to_vmem [thread:$0]  %s1413_s7, 1024, %s62_s23, [#allocation7], %s1204_s30, %s1204_s30, %s1205_s14  }
  0x2c   :  { %s1208_s28 = smov [#allocation11]  }
  0x2d   :  { %s89_s29 = sshll.u32 %s1208_s28, 4  ;;  %s90_s29 = int_to_ptr.vmem [resolvable:$true] %s89_s29 }
  0x2e   :  { %s1162_s15 = scalar_lea.vmem %s90_s29, 1024  ;;  %p1167_p7 = scmp.lt.s32.totalorder %s90_s29, %s90_s29 }
  0x2f   :  { %p1163_p6 = scmp.ne.s32.totalorder %s90_s29, %s1162_s15  ;;  %p1168_p8 = scmp.lt.s32.totalorder %s1162_s15, %s1162_s15 }
  0x31   :  { %p1169_p9 = por %p1168_p8, %p1167_p7 }
  0x33   :  { %p1170_p10 = pnand %p1169_p9, %p1163_p6 }
  0x35   :  { %1173 = shalt.err (!%p1170_p10)
}
  0x36   :  { %95 = dma.hbm_to_vmem [thread:$0]  %s1417_s11, 1024, %s90_s29, [#allocation10], %s1204_s30, %s1204_s30, %s1205_s14  }
  0x37   :  { %1194 = dma.done.wait [#allocation4], 1024  }
  0x38   :  { %1195 = vsyncadd [#allocation4], 4294966272 }
  0x39   :  { %1196 = dma.done.wait [#allocation7], 2048  }
  0x3a   :  { %1197 = vsyncadd [#allocation7], 4294965248 }
  0x3b   :  { %1198 = dma.done.wait [#allocation10], 2048  }
  0x3c   :  { %1199 = vsyncadd [#allocation10], 4294965248  ;;  %v1209_v0 = vmov 0.0   ;;  %vm1210_vm0 = vmmov 0   ;;  %v122_v1 = vld [vmem:[%s1407_s1] sm:$0xf] }
  0x3d   :  { %918 = vmatprep.subr.bf16.mxu0 %v1209_v0  ;;  %118 = vst [vmem:[#allocation2] sm:$0x3] %v1209_v0  ;;  %920 = vmatprep.mubr.msk.bf16.mxu0 %vm1210_vm0, %v1209_v0  ;;  %vm135_vm1 = vcmask 1041408   ;;  %v119_v2 = vld [vmem:[%s1406_s0] sm:$0xff]  ;;  %v120_v3 = vld [vmem:[%s1406_s0 + $0x8] sm:$0xff]  ;;  %v123_v4 = vpack.c.bf16 %v122_v1, %v122_v1  ;;  %v1035_v8 = vld [vmem:[#allocation3 + $0x30] sm:$0xff]  }
  0x3e   :  { %924 = vmatprep.subr.bf16.mxu1 %v1209_v0  ;;  %940 = vmatprep.mubr.msk.bf16.mxu1 %vm1210_vm0, %v1209_v0  ;;  %v1034_v5 = vld [vmem:[#allocation3 + $0x38] sm:$0xff]   ;;  %v121_v7 = vpack.c.bf16 %v120_v3, %v119_v2  ;;  %vm131_vm2 = vcmask 31744   ;;  %v1036_v9 = vld [vmem:[#allocation3 + $0x28] sm:$0xff]   ;;  %v1037_v10 = vld [vmem:[#allocation3 + $0x20] sm:$0xff]   ;;  %vm790_vm3 = vcmask 1041409  }
  0x3f   :  { %v137_v6 = vsel %vm135_vm1, %v123_v4, 0  ;;  %925 = vmatpush3.bf16.msra.mxu1 %v1034_v5  ;;  %v1038_v11 = vld [vmem:[#allocation3 + $0x18] sm:$0xff]   ;;  %v1039_v12 = vld [vmem:[#allocation3 + $0x10] sm:$0xff]   ;;  %v1040_v13 = vld [vmem:[#allocation3 + $0x8] sm:$0xff]  }
  0x40   :  { %919 = vmatpush3.bf16.msra.mxu0 %v137_v6  ;;  %926 = vmatprep.subr.bf16.mxu1 %v1209_v0  ;;  %v1041_v14 = vld [vmem:[#allocation3] sm:$0xff]   ;;  %v1042_v15 = vld [vmem:[#allocation6 + $0x38] sm:$0xff]   ;;  %v1043_v16 = vld [vmem:[#allocation6 + $0x30] sm:$0xff]  }
  0x41   :  { %944 = vmatprep.subr.bf16.mxu0 %v1209_v0  ;;  %v1044_v17 = vld [vmem:[#allocation6 + $0x28] sm:$0xff]   ;;  %v1045_v18 = vld [vmem:[#allocation6 + $0x20] sm:$0xff]   ;;  %v1046_v19 = vld [vmem:[#allocation6 + $0x18] sm:$0xff]  }
  0x42   :  { %v824_v20 = vld [vmem:[%s1408_s2] ss:$0 sm:$0xff]  ;;  %v1047_v32 = vld [vmem:[#allocation6 + $0x10] sm:$0xff]   ;;  %v1048_v33 = vld [vmem:[#allocation6 + $0x8] sm:$0xff]  }
  0x43   :  { %921 = vmatmul.mubr.msk.bf16.vlgmr.msra.gmra.mxu0 %vm131_vm2, %v121_v7  ;;  %927 = vmatpush3.bf16.msra.mxu1 %v1035_v8  ;;  %v1049_v34 = vld [vmem:[#allocation6] sm:$0xff]   ;;  %v1050_v35 = vld [vmem:[#allocation8 + $0x38] sm:$0xff]   ;;  %v1051_v36 = vld [vmem:[#allocation8 + $0x30] sm:$0xff]  }
  0x44   :  { %928 = vmatprep.subr.bf16.mxu1 %v1209_v0  ;;  %960 = vmatprep.mubr.msk.bf16.mxu0 %vm1210_vm0, %v1209_v0  ;;  %v1052_v37 = vld [vmem:[#allocation8 + $0x28] sm:$0xff]   ;;  %v1053_v38 = vld [vmem:[#allocation8 + $0x20] sm:$0xff]   ;;  %v826_v39 = vld [vmem:[%s1410_s4] ss:$0 sm:$0xff] }
  0x45   :  { %945 = vmatpush3.bf16.msra.mxu0 %v1042_v15  ;;  %v1054_v51 = vld [vmem:[#allocation8 + $0x18] sm:$0xff]   ;;  %v1055_v52 = vld [vmem:[#allocation8 + $0x10] sm:$0xff]   ;;  %v1056_v53 = vld [vmem:[#allocation8 + $0x8] sm:$0xff]  }
  0x46   :  { %946 = vmatprep.subr.bf16.mxu0 %v1209_v0  ;;  %v1057_v54 = vld [vmem:[#allocation8] sm:$0xff]   ;;  %v1058_v55 = vld [vmem:[#allocation9 + $0x38] sm:$0xff]   ;;  %v1059_v56 = vld [vmem:[#allocation9 + $0x30] sm:$0xff]  }
  0x47   :  { %929 = vmatpush3.bf16.msra.mxu1 %v1036_v9  ;;  %v1060_v57 = vld [vmem:[#allocation9 + $0x28] sm:$0xff]   ;;  %v1061_v58 = vld [vmem:[#allocation9 + $0x20] sm:$0xff]   ;;  %v1062_v59 = vld [vmem:[#allocation9 + $0x18] sm:$0xff]  }
  0x48   :  { %930 = vmatprep.subr.bf16.mxu1 %v1209_v0  ;;  %v835_v60 = vld [vmem:[%s1412_s6] ss:$0 sm:$0xff]  ;;  %v1067_v15 = vld [vmem:[#allocation11 + $0x30] sm:$0xff]  }
  0x49   :  { %947 = vmatpush3.bf16.msra.mxu0 %v1043_v16  ;;  %v1068_v16 = vld [vmem:[#allocation11 + $0x28] sm:$0xff]  }
  0x4a   :  { %948 = vmatprep.subr.bf16.mxu0 %v1209_v0 }
  0x4b   :  { %931 = vmatpush3.bf16.msra.mxu1 %v1037_v10 }
  0x4c   :  { %932 = vmatprep.subr.bf16.mxu1 %v1209_v0 }
  0x4d   :  { %949 = vmatpush3.bf16.msra.mxu0 %v1044_v17  ;;  %v1069_v17 = vld [vmem:[#allocation11 + $0x20] sm:$0xff]  }
  0x4e   :  { %950 = vmatprep.subr.bf16.mxu0 %v1209_v0 }
  0x4f   :  { %933 = vmatpush3.bf16.msra.mxu1 %v1038_v11  ;;  %v1063_v11 = vld [vmem:[#allocation9 + $0x10] sm:$0xff]  }
  0x50   :  { %934 = vmatprep.subr.bf16.mxu1 %v1209_v0 }
  0x51   :  { %951 = vmatpush3.bf16.msra.mxu0 %v1045_v18  ;;  %v844_v18 = vld [vmem:[%s1414_s8] ss:$0 sm:$0xff] }
  0x52   :  { %952 = vmatprep.subr.bf16.mxu0 %v1209_v0 }
  0x53   :  { %935 = vmatpush3.bf16.msra.mxu1 %v1039_v12  ;;  %v1064_v12 = vld [vmem:[#allocation9 + $0x8] sm:$0xff]  }
  0x54   :  { %936 = vmatprep.subr.bf16.mxu1 %v1209_v0 }
  0x55   :  { %953 = vmatpush3.bf16.msra.mxu0 %v1046_v19 }
  0x56   :  { %954 = vmatprep.subr.bf16.mxu0 %v1209_v0 }
  0x57   :  { %937 = vmatpush3.bf16.msra.mxu1 %v1040_v13  ;;  %v1065_v13 = vld [vmem:[#allocation9] sm:$0xff]  }
  0x58   :  { %938 = vmatprep.subr.bf16.mxu1 %v1209_v0 }
  0x59   :  { %955 = vmatpush3.bf16.msra.mxu0 %v1047_v32  ;;  %v1072_v32 = vld [vmem:[#allocation11 + $0x8] sm:$0xff]  }
  0x5a   :  { %956 = vmatprep.subr.bf16.mxu0 %v1209_v0 }
  0x5b   :  { %939 = vmatpush3.bf16.msra.mxu1 %v1041_v14  ;;  %v1066_v14 = vld [vmem:[#allocation11 + $0x38] sm:$0xff]  }
  0x5c   :  { %964 = vmatprep.subr.bf16.mxu1 %v1209_v0 }
  0x5d   :  { %957 = vmatpush3.bf16.msra.mxu0 %v1048_v33  ;;  %v1073_v33 = vld [vmem:[#allocation11] sm:$0xff]  }
  0x5e   :  { %958 = vmatprep.subr.bf16.mxu0 %v1209_v0 }
  0x61   :  { %959 = vmatpush3.bf16.msra.mxu0 %v1049_v34  ;;  %v853_v34 = vld [vmem:[%s1416_s10] ss:$0 sm:$0xff]  ;;  %s1211_s10 = smov [#allocation12]  }
  0x62   :  { %984 = vmatprep.subr.bf16.mxu0 %v1209_v0 }
 0x103   :  { %v173_v21 = vpop.f32.mrf.mxu0 }
 0x104   :  { %v174_v22 = vadd.f32 %v824_v20, %v173_v21 }
 0x105   :  { %v922_v23 = vpop.f32.mrf.mxu0 }
 0x106   :  { %v180_v25 = vmul.f32 0.1, %v174_v22 }
 0x107   :  { %v176_v24 = vpop.f32.mrf.mxu0 }
 0x108   :  { %v177_v26 = vadd.f32 %v824_v20, %v176_v24  ;;  %v1348_v29 = vmax.f32 %v174_v22, %v180_v25 }
 0x109   :  { %v923_v27 = vpop.f32.mrf.mxu0 }
 0x10a   :  { %v181_v28 = vmul.f32 0.1, %v177_v26 }
 0x10c   :  { %v1350_v30 = vmax.f32 %v177_v26, %v181_v28 }
 0x10e   :  { %v184_v31 = vpack.c.bf16 %v1350_v30, %v1348_v29 }
 0x110   :  { %941 = vmatmul.mubr.bf16.vlgmr.msra.gmra.mxu1 %v184_v31  ;;  %v1071_v31 = vld [vmem:[#allocation11 + $0x10] sm:$0xff]  }
 0x111   :  { %980 = vmatprep.mubr.msk.bf16.mxu1 %vm1210_vm0, %v1209_v0  ;;  %965 = vmatpush3.bf16.msra.mxu1 %v1050_v35 }
 0x112   :  { %966 = vmatprep.subr.bf16.mxu1 %v1209_v0 }
 0x115   :  { %967 = vmatpush3.bf16.msra.mxu1 %v1051_v36 }
 0x116   :  { %968 = vmatprep.subr.bf16.mxu1 %v1209_v0 }
 0x119   :  { %969 = vmatpush3.bf16.msra.mxu1 %v1052_v37 }
 0x11a   :  { %970 = vmatprep.subr.bf16.mxu1 %v1209_v0 }
 0x11d   :  { %971 = vmatpush3.bf16.msra.mxu1 %v1053_v38 }
 0x11e   :  { %972 = vmatprep.subr.bf16.mxu1 %v1209_v0 }
 0x121   :  { %973 = vmatpush3.bf16.msra.mxu1 %v1054_v51 }
 0x122   :  { %974 = vmatprep.subr.bf16.mxu1 %v1209_v0 }
 0x125   :  { %975 = vmatpush3.bf16.msra.mxu1 %v1055_v52 }
 0x126   :  { %976 = vmatprep.subr.bf16.mxu1 %v1209_v0 }
 0x129   :  { %977 = vmatpush3.bf16.msra.mxu1 %v1056_v53 }
 0x12a   :  { %978 = vmatprep.subr.bf16.mxu1 %v1209_v0 }
 0x12d   :  { %979 = vmatpush3.bf16.msra.mxu1 %v1057_v54 }
 0x12e   :  { %1004 = vmatprep.subr.bf16.mxu1 %v1209_v0 }
 0x1d0   :  { %v290_v40 = vpop.f32.mrf.mxu1 }
 0x1d1   :  { %v291_v41 = vadd.f32 %v826_v39, %v290_v40 }
 0x1d2   :  { %v942_v42 = vpop.f32.mrf.mxu1 }
 0x1d3   :  { %v297_v44 = vmul.f32 0.1, %v291_v41 }
 0x1d4   :  { %v293_v43 = vpop.f32.mrf.mxu1 }
 0x1d5   :  { %v294_v45 = vadd.f32 %v826_v39, %v293_v43  ;;  %v299_v48 = vmax.f32 %v291_v41, %v297_v44 }
 0x1d6   :  { %v943_v46 = vpop.f32.mrf.mxu1 }
 0x1d7   :  { %v298_v47 = vmul.f32 0.1, %v294_v45 }
 0x1d9   :  { %v300_v49 = vmax.f32 %v294_v45, %v298_v47 }
 0x1db   :  { %v301_v50 = vpack.c.bf16 %v300_v49, %v299_v48 }
 0x1dd   :  { %961 = vmatmul.mubr.bf16.vlgmr.msra.gmra.mxu0 %v301_v50 }
 0x1de   :  { %1000 = vmatprep.mubr.msk.bf16.mxu0 %vm1210_vm0, %v1209_v0  ;;  %985 = vmatpush3.bf16.msra.mxu0 %v1058_v55 }
 0x1df   :  { %986 = vmatprep.subr.bf16.mxu0 %v1209_v0 }
 0x1e2   :  { %987 = vmatpush3.bf16.msra.mxu0 %v1059_v56 }
 0x1e3   :  { %988 = vmatprep.subr.bf16.mxu0 %v1209_v0 }
 0x1e6   :  { %989 = vmatpush3.bf16.msra.mxu0 %v1060_v57 }
 0x1e7   :  { %990 = vmatprep.subr.bf16.mxu0 %v1209_v0 }
 0x1ea   :  { %991 = vmatpush3.bf16.msra.mxu0 %v1061_v58 }
 0x1eb   :  { %992 = vmatprep.subr.bf16.mxu0 %v1209_v0 }
 0x1ee   :  { %993 = vmatpush3.bf16.msra.mxu0 %v1062_v59 }
 0x1ef   :  { %994 = vmatprep.subr.bf16.mxu0 %v1209_v0 }
 0x1f2   :  { %995 = vmatpush3.bf16.msra.mxu0 %v1063_v11 }
 0x1f3   :  { %996 = vmatprep.subr.bf16.mxu0 %v1209_v0 }
 0x1f6   :  { %997 = vmatpush3.bf16.msra.mxu0 %v1064_v12 }
 0x1f7   :  { %998 = vmatprep.subr.bf16.mxu0 %v1209_v0 }
 0x1fa   :  { %999 = vmatpush3.bf16.msra.mxu0 %v1065_v13 }
 0x29d   :  { %v407_v61 = vpop.f32.mrf.mxu0 }
 0x29e   :  { %v408_v62 = vadd.f32 %v835_v60, %v407_v61 }
 0x29f   :  { %v962_v63 = vpop.f32.mrf.mxu0 }
 0x2a0   :  { %v414_v1 = vadd.f32 %v408_v62, %v1348_v29 }
 0x2a1   :  { %v410_v2 = vpop.f32.mrf.mxu0 }
 0x2a2   :  { %v411_v3 = vadd.f32 %v835_v60, %v410_v2  ;;  %v416_v5 = vmul.f32 0.1, %v414_v1 }
 0x2a3   :  { %v963_v4 = vpop.f32.mrf.mxu0 }
 0x2a4   :  { %v415_v6 = vadd.f32 %v411_v3, %v1350_v30  ;;  %v418_v8 = vmax.f32 %v414_v1, %v416_v5  ;;  %v1070_v30 = vld [vmem:[#allocation11 + $0x18] sm:$0xff]  }
 0x2a6   :  { %v417_v7 = vmul.f32 0.1, %v415_v6 }
 0x2a8   :  { %v419_v9 = vmax.f32 %v415_v6, %v417_v7 }
 0x2aa   :  { %v420_v10 = vpack.c.bf16 %v419_v9, %v418_v8 }
 0x2ac   :  { %981 = vmatmul.mubr.bf16.vlgmr.msra.gmra.mxu1 %v420_v10 }
 0x2ad   :  { %1020 = vmatprep.mubr.msk.bf16.mxu1 %vm1210_vm0, %v1209_v0  ;;  %1005 = vmatpush3.bf16.msra.mxu1 %v1066_v14 }
 0x2ae   :  { %1006 = vmatprep.subr.bf16.mxu1 %v1209_v0 }
 0x2b1   :  { %1007 = vmatpush3.bf16.msra.mxu1 %v1067_v15 }
 0x2b2   :  { %1008 = vmatprep.subr.bf16.mxu1 %v1209_v0 }
 0x2b5   :  { %1009 = vmatpush3.bf16.msra.mxu1 %v1068_v16 }
 0x2b6   :  { %1010 = vmatprep.subr.bf16.mxu1 %v1209_v0 }
 0x2b9   :  { %1011 = vmatpush3.bf16.msra.mxu1 %v1069_v17 }
 0x2ba   :  { %1012 = vmatprep.subr.bf16.mxu1 %v1209_v0 }
 0x2bd   :  { %1013 = vmatpush3.bf16.msra.mxu1 %v1070_v30 }
 0x2be   :  { %1014 = vmatprep.subr.bf16.mxu1 %v1209_v0 }
 0x2c1   :  { %1015 = vmatpush3.bf16.msra.mxu1 %v1071_v31 }
 0x2c2   :  { %1016 = vmatprep.subr.bf16.mxu1 %v1209_v0 }
 0x2c5   :  { %1017 = vmatpush3.bf16.msra.mxu1 %v1072_v32 }
 0x2c6   :  { %1018 = vmatprep.subr.bf16.mxu1 %v1209_v0  ;;  %v862_v0 = vld [vmem:[%s1418_s12] ss:$0 sm:$0xff]  ;;  %s813_s12 = sshll.u32 %s1211_s10, 4  ;;  %s814_s12 = int_to_ptr.vmem [resolvable:$true] %s813_s12 }
 0x2c7   :  { %s1174_s24 = scalar_lea.vmem %s814_s12, 32  ;;  %p1179_p12 = scmp.lt.s32.totalorder %s814_s12, %s814_s12 }
 0x2c8   :  { %p1175_p11 = scmp.ne.s32.totalorder %s814_s12, %s1174_s24  ;;  %p1180_p13 = scmp.lt.s32.totalorder %s1174_s24, %s1174_s24 }
 0x2c9   :  { %1019 = vmatpush3.bf16.msra.mxu1 %v1073_v33 }
 0x2ca   :  { %p1181_p0 = por %p1180_p13, %p1179_p12 }
 0x2cc   :  { %p1182_p1 = pnand %p1181_p0, %p1175_p11 }
 0x36c   :  { %v526_v19 = vpop.f32.mrf.mxu1 }
 0x36d   :  { %v527_v20 = vadd.f32 %v844_v18, %v526_v19 }
 0x36e   :  { %v982_v21 = vpop.f32.mrf.mxu1 }
 0x36f   :  { %v533_v23 = vmul.f32 0.1, %v527_v20 }
 0x370   :  { %v529_v22 = vpop.f32.mrf.mxu1 }
 0x371   :  { %v530_v24 = vadd.f32 %v844_v18, %v529_v22  ;;  %v535_v27 = vmax.f32 %v527_v20, %v533_v23 }
 0x372   :  { %v983_v25 = vpop.f32.mrf.mxu1 }
 0x373   :  { %v534_v26 = vmul.f32 0.1, %v530_v24 }
 0x375   :  { %v536_v28 = vmax.f32 %v530_v24, %v534_v26 }
 0x377   :  { %v537_v29 = vpack.c.bf16 %v536_v28, %v535_v27 }
 0x379   :  { %1001 = vmatmul.mubr.bf16.vlgmr.msra.gmra.mxu0 %v537_v29 }
 0x439   :  { %v643_v35 = vpop.f32.mrf.mxu0 }
 0x43a   :  { %v644_v36 = vadd.f32 %v853_v34, %v643_v35 }
 0x43b   :  { %v1002_v37 = vpop.f32.mrf.mxu0 }
 0x43c   :  { %v650_v38 = vadd.f32 %v644_v36, %v418_v8  ;;  %v773_v8 = vld [vmem:[#allocation2] sm:$0x3] }
 0x43d   :  { %v646_v39 = vpop.f32.mrf.mxu0 }
 0x43e   :  { %v647_v40 = vadd.f32 %v853_v34, %v646_v39  ;;  %v652_v42 = vmul.f32 0.1, %v650_v38 }
 0x43f   :  { %v1003_v41 = vpop.f32.mrf.mxu0 }
 0x440   :  { %v651_v43 = vadd.f32 %v647_v40, %v419_v9  ;;  %v654_v45 = vmax.f32 %v650_v38, %v652_v42 }
 0x442   :  { %v653_v44 = vmul.f32 0.1, %v651_v43 }
 0x444   :  { %v655_v46 = vmax.f32 %v651_v43, %v653_v44 }
 0x446   :  { %v656_v47 = vpack.c.bf16 %v655_v46, %v654_v45 }
 0x448   :  { %1021 = vmatmul.mubr.bf16.vlgmr.msra.gmra.mxu1 %v656_v47 }
 0x508   :  { %v762_v48 = vpop.f32.mrf.mxu1 }
 0x509   :  { %v763_v49 = vadd.f32 %v862_v0, %v762_v48 }
 0x50a   :  { %v1022_v50 = vpop.f32.mrf.mxu1 }
 0x50b   :  { %v769_v51 = vmul.f32 0.1, %v763_v49 }
 0x50c   :  { %v765_v52 = vpop.f32.mrf.mxu1 }
 0x50d   :  { %v771_v53 = vmax.f32 %v763_v49, %v769_v51  ;;  %v766_v54 = vadd.f32 %v862_v0, %v765_v52 }
 0x50e   :  { %v1023_v55 = vpop.f32.mrf.mxu1 }
 0x50f   :  { %v774_v56 = vrot.slane %v771_v53, 4  ;;  %v770_v57 = vmul.f32 0.1, %v766_v54 }
 0x511   :  { %v775_v58 = vadd.f32 %v774_v56, %v771_v53  ;;  %v772_v59 = vmax.f32 %v766_v54, %v770_v57 }
 0x513   :  { %v776_v60 = vrot.slane %v775_v58, 2  ;;  %v780_v61 = vrot.slane %v772_v59, 4 }
 0x515   :  { %v777_v62 = vadd.f32 %v776_v60, %v775_v58  ;;  %v781_v63 = vadd.f32 %v780_v61, %v772_v59 }
 0x517   :  { %v778_v1 = vrot.slane %v777_v62, 1  ;;  %v782_v2 = vrot.slane %v781_v63, 2 }
 0x519   :  { %v783_v3 = vadd.f32 %v782_v2, %v781_v63  ;;  %v779_v4 = vadd.f32 %v778_v1, %v777_v62 }
 0x51b   :  { %v784_v5 = vrot.slane %v783_v3, 1  ;;  %v786_v7 = vmul.f32 0.125, %v779_v4 }
 0x51d   :  { %v785_v6 = vadd.f32 %v784_v5, %v783_v3 }
 0x51f   :  { %v787_v9 = vmul.f32 0.125, %v785_v6 }
 0x521   :  { %v791_v10 = vsel %vm790_vm3, %v787_v9, %v786_v7 }
 0x522   :  { %v793_v11 = vadd.f32 %v791_v10, %v773_v8 }
 0x524   :  { %794 = vst [vmem:[#allocation2] sm:$0x3] %v793_v11 }
 0x52b   :  { %v798_v12 = vld [vmem:[#allocation2] sm:$0x3] }
 0x52c   :  { %v800_v13 = vsel %vm135_vm1, %v798_v12, 0.0  ;;  %v799_v15 = vmul.f32 2.0, %v798_v12 }
 0x52d   :  { %801 = vadd.xlane.f32.xlu0 %v800_v13 }
 0x5b6   :  { %v802_v14 = vpop.xlane.xlu0 %801 }
 0x5b7   :  { %v804_v16 = vmul.f32 0.0078125, %v802_v14 }
 0x5b9   :  { %v805_v17 = vsub.f32 %v799_v15, %v804_v16 }
 0x5bb   :  { %806 = vst [vmem:[#allocation12] sm:$0x3] %v805_v17 }
 0x5bc   :  { %1185 = shalt.err (!%p1182_p1)
}
 0x5bd   :  { %816 = dma.vmem_to_hbm [thread:$0]  %s814_s12, 32, %s1419_s13, [#allocation5]  }
 0x5be   :  { %1200 = dma.done.wait [#allocation5], 32  }
 0x5bf   :  { %1201 = vsyncadd [#allocation5], 4294967264 }
 0x5c0   :  { %820 = vsyncpa [#allocation4], 1 }
 0x5c1   :  { %821 = vsyncpa [#allocation7], 1 }
 0x5c2   :  { %822 = vsyncpa [#allocation10], 1 }
 0x5c3   :  { %823 = vsyncpa [#allocation5], 1 }

</bundles_post_ra>
